<compile_context>
chip_gen: v7x
topology: tpu7x:2x2x1
jax: 0.10.0
libtpu: 0.0.40
codegen_flags: <defaults>
</compile_context>

<pallas_src>
import jax
import jax.numpy as jnp
from jax.experimental import pallas as pl
from jax.experimental.pallas import tpu as pltpu


_BLOCK_BUDGET_BYTES = 6 * 1024 * 1024   # per input block; <= ~24 MiB resident double-buffered
_VMEM_LIMIT_BYTES = 32 * 1024 * 1024    # explicit scoped-VMEM limit, safe on v5e/v6e/v7x
_MIN_GRID_STEPS = 8                     # keep both v7x TensorCores fed on the parallel grid


def _cdiv(a: int, b: int) -> int:
    return -(-a // b)


def _round_up(x: int, m: int) -> int:
    return _cdiv(x, m) * m


def _sublane(dtype) -> int:
    # 8 rows for 4-byte dtypes, 16 for bf16/f16, 32 for int8/fp8.
    return max(8, 32 // jnp.dtype(dtype).itemsize)


# ---------------- kernel bodies (pure copies; the chomp lives in the BlockSpecs) ------

def _make_row_kernel(l_out: int):
    def kernel(x_ref, o_ref):
        # Lane-0-aligned static slice: only the last vreg column per row is a masked vst.
        o_ref[...] = x_ref[:, pl.ds(0, l_out)]
    return kernel


def _tile_kernel(x_ref, o_ref):
    # Full-tile copy: input and output blocks index identical columns, so the chomp is
    # entirely expressed by the grid never covering the discarded tail.
    o_ref[...] = x_ref[...]


# ---------------- tiling heuristics ----------------

def _pick_c_tile(n: int, c: int, sublane: int, max_tc: int) -> int:
    """C tile: a sublane multiple <= C (or full C when C is small), bounded by the VMEM
    budget, and shrunk so the parallel grid has enough steps for two TensorCores."""
    if c <= sublane:
        return c
    hi = (c // sublane) * sublane                       # largest sublane multiple <= C
    tc = min(hi, max(sublane, (max_tc // sublane) * sublane))
    want_tiles = _cdiv(_MIN_GRID_STEPS, max(n, 1))
    if want_tiles > 1:
        tc_for_steps = max(sublane, _round_up(_cdiv(c, want_tiles), sublane))
        tc = min(tc, tc_for_steps)
    return tc


# ---------------- public wrapper ----------------

def chomp1d(x: jax.Array, chomp_size: int, *,
            block_budget_bytes: int = _BLOCK_BUDGET_BYTES) -> jax.Array:
    """Pallas equivalent of Chomp1d.forward: x[:, :, :-chomp_size]."""
    assert chomp_size > 0, "chomp_size must be positive (x[..., :-0] would be empty)"
    n, c, l = x.shape
    l_out = l - chomp_size
    assert l_out > 0, "chomp_size must be smaller than the sequence length"

    itemsize = jnp.dtype(x.dtype).itemsize
    sublane = _sublane(x.dtype)
    out_shape = jax.ShapeDtypeStruct((n, c, l_out), x.dtype)

    # Input columns we ever touch: the kept l_out columns rounded up to a whole 128-lane
    # tile (reads at most 127 chomped columns), clamped to L so the full-array-dim
    # exception applies for short rows.
    l_in_blk = min(l, _round_up(l_out, 128))

    row_path_fits = min(c, sublane) * l_in_blk * itemsize <= block_budget_bytes

    if row_path_fits:
        # ---- row path: whole (clipped) rows per block; legal for any l_out ----
        max_tc = block_budget_bytes // max(l_in_blk * itemsize, 1)
        tc = _pick_c_tile(n, c, sublane, max_tc)
        grid = (n, _cdiv(c, tc))
        in_spec = pl.BlockSpec((pl.Squeezed(), tc, l_in_blk), lambda i, j: (i, j, 0))
        out_spec = pl.BlockSpec((pl.Squeezed(), tc, l_out), lambda i, j: (i, j, 0))
        kernel = _make_row_kernel(l_out)
        semantics = ("parallel", "parallel")
    else:
        # ---- column-tiled path: very long rows; 128-multiple lane tiles bound VMEM ----
        # Here l_out is necessarily >> 128, so lane tiles never exceed the output width
        # by more than the masked tail of the final tile.
        tc = c if c <= sublane else sublane
        max_tl = max(128, (block_budget_bytes // max(tc * itemsize, 1)) // 128 * 128)
        tl = min(max_tl, _round_up(l_out, 128))
        grid = (n, _cdiv(c, tc), _cdiv(l_out, tl))
        in_spec = pl.BlockSpec((pl.Squeezed(), tc, tl), lambda i, j, k: (i, j, k))
        out_spec = pl.BlockSpec((pl.Squeezed(), tc, tl), lambda i, j, k: (i, j, k))
        kernel = _tile_kernel
        semantics = ("parallel", "parallel", "parallel")

    return pl.pallas_call(
        kernel,
        out_shape=out_shape,
        grid_spec=pltpu.PrefetchScalarGridSpec(
            num_scalar_prefetch=0,
            grid=grid,
            in_specs=[in_spec],
            out_specs=out_spec,
        ),
        compiler_params=pltpu.CompilerParams(
            dimension_semantics=semantics,
            vmem_limit_bytes=_VMEM_LIMIT_BYTES,
        ),
    )(x)


if __name__ == "__main__":
    key = jax.random.PRNGKey(0)
    k1, k2, k3, k4 = jax.random.split(key, 4)

    # Case 1: original small TCN shape (unaligned l_out = 13) -> row path, full-dim blocks.
    chomp_size = 3
    x1 = jax.random.normal(k1, (2, 4, 16), dtype=jnp.float32)
    y1 = jax.block_until_ready(chomp1d(x1, chomp_size))
    assert y1.shape == (2, 4, 13)
    assert jnp.array_equal(y1, x1[:, :, :-chomp_size])

    # Case 2: C > sublane and not a multiple of it -> row path with C tiling + masked C edge.
    x2 = jax.random.normal(k2, (2, 20, 200), dtype=jnp.float32)
    y2 = jax.block_until_ready(chomp1d(x2, 5))
    assert y2.shape == (2, 20, 195)
    assert jnp.array_equal(y2, x2[:, :, :-5])

    # Case 3: force the column-tiled long-row path with a tiny block budget
    #         (l_out an exact multiple of the 256-lane tile).
    x3 = jax.random.normal(k3, (2, 8, 1031), dtype=jnp.float32)
    y3 = jax.block_until_ready(chomp1d(x3, 7, block_budget_bytes=8192))
    assert y3.shape == (2, 8, 1024)
    assert jnp.array_equal(y3, x3[:, :, :-7])

    # Case 4: column-tiled path with a masked lane edge (l_out % tile != 0) and an
    #         out-of-bounds input read on the final column tile (discarded by masking).
    x4 = jax.random.normal(k4, (2, 8, 903), dtype=jnp.float32)
    y4 = jax.block_until_ready(chomp1d(x4, 3, block_budget_bytes=8192))
    assert y4.shape == (2, 8, 900)
    assert jnp.array_equal(y4, x4[:, :, :-3])

    print("KERNEL_OK")
</pallas_src>

<mosaic_0001>
module attributes {stable_mosaic.version = 11 : i64} {
  func.func @kernel(%arg0: i32, %arg1: i32, %arg2: memref<1x4x16xf32, #tpu.memory_space<vmem>>, %arg3: memref<1x4x13xf32, #tpu.memory_space<vmem>>) attributes {dimension_semantics = [#tpu.dimension_semantics<parallel>, #tpu.dimension_semantics<parallel>], iteration_bounds = array<i64: 2, 1>, scalar_prefetch = 0 : i64, scratch_operands = 0 : i64, tpu.core_type = #tpu.core_type<tc>, window_params = [{transform_indices = @transform_0, window_bounds = array<i64: 1, 4, 16>}, {transform_indices = @transform_1, window_bounds = array<i64: 1, 4, 13>}]} {
    %c0 = arith.constant 0 : index
    %c0_0 = arith.constant 0 : index
    %c0_1 = arith.constant 0 : index
    %0 = vector.load %arg2[%c0, %c0_0, %c0_1] : memref<1x4x16xf32, #tpu.memory_space<vmem>>, vector<1x4x13xf32>
    %1 = vector.shape_cast %0 : vector<1x4x13xf32> to vector<4x13xf32>
    %c0_2 = arith.constant 0 : index
    %c0_3 = arith.constant 0 : index
    %c0_4 = arith.constant 0 : index
    %2 = vector.load %arg3[%c0_2, %c0_3, %c0_4] : memref<1x4x13xf32, #tpu.memory_space<vmem>>, vector<1x4x13xf32>
    %3 = vector.shape_cast %2 : vector<1x4x13xf32> to vector<4x13xf32>
    %4 = vector.shape_cast %1 : vector<4x13xf32> to vector<1x4x13xf32>
    tpu.vector_store %arg3[%c0_2, %c0_3, %c0_4], %4 {strides = array<i32>} : memref<1x4x13xf32, #tpu.memory_space<vmem>>, vector<1x4x13xf32>,
    return
  }
  func.func @transform_0(%arg0: i32, %arg1: i32) -> (i32, i32, i32) {
    %c0_i32 = arith.constant 0 : i32
    %c0_i32_0 = arith.constant 0 : i32
    return %arg0, %arg1, %c0_i32 : i32, i32, i32
  }
  func.func @transform_1(%arg0: i32, %arg1: i32) -> (i32, i32, i32) {
    %c0_i32 = arith.constant 0 : i32
    %c0_i32_0 = arith.constant 0 : i32
    return %arg0, %arg1, %c0_i32 : i32, i32, i32
  }
}

</mosaic_0001>

<bundles_post_ra>
// kernel: tpu_custom_call.1
= control target key start
LH: loop header
LB: loop body
LE: loop exit
PB: predicated region body
PF: predicated region fallthrough
CT: control target
= control target key end

     0   :  { %6 = vsyncpa [#allocation3], 0  ;;  %s620_s0 = inlined_call_operand.hbm [shape: f32[2,4,16], index: 0, kind: input, shape index: {}]   ;;  %s621_s1 = inlined_call_operand.hbm [shape: f32[2,4,13], index: 1, kind: output, shape index: {}]  }
   0x1   :  { %8 = vsyncpa [#allocation3 + $0x1], 0 }
   0x2   :  { %9 = vsyncpa [#allocation4], 0 }
   0x3   :  { %11 = vsyncpa [#allocation4 + $0x1], 0  ;;  %s448_s6 = smov 0   ;;  %s450_s7 = smov 0  }
   0x4   :  { %s452_s8 = smov 0   ;;  %s454_s9 = smov 0  }
   0x5   :  { %s456_s10 = smov 0   ;;  %s458_s11 = smov 0  }
   0x6 LB: > { %s247_s12 = sadd.s32 4294967295, %s434_s11   ;;  %s248_s13 = sadd.s32 4294967294, %s434_s11   ;;  %s434_s11 = sphi %s458_s11, %s17_s11   ;;  %s430_s10 = sphi %s456_s10, %s637_s10   ;;  %s426_s9 = sphi %s454_s9, %s636_s9   ;;  %s422_s8 = sphi %s452_s8, %s635_s8   ;;  %s418_s7 = sphi %s450_s7, %s634_s7   ;;  %s414_s6 = sphi %s448_s6, %s633_s6  }
   0x7   : > { %s29_s14 = sadd.s32 1, %s430_s10  ;;  %s38_s15 = sadd.s32 1, %s422_s8 }
   0x8   : > { %p31_p0 = scmp.ge.s32.totalorder %s29_s14, 2  ;;  %p45_p1 = scmp.ne.s32.totalorder %s422_s8, %s418_s7 }
   0x9   : > { %p46_p2 = scmp.eq.s32.totalorder %s434_s11, 0  ;;  %p51_p3 = scmp.ne.s32.totalorder %s418_s7, %s414_s6 }
   0xa   : > { %s639_s14 = smov (%p31_p0, %s29_s14), 0  ;;  %p52_p5 = scmp.eq.s32.totalorder %s247_s12, 0 }
   0xb   : > { %p489_p4 = por %p46_p2, %p45_p1  ;;  %s33_s17 = ssub.s32 %s430_s10, %s639_s14 }
   0xc   : > { %p77_p6 = scmp.eq.s32.totalorder %s247_s12, 1  ;;  %p36_p7 = scmp.eq.s32.totalorder %s33_s17, 0 }
   0xd   : > { %p495_p8 = por %p52_p5, %p51_p3  ;;  %p83_p10 = scmp.eq.s32.totalorder %s248_s13, 1 }
   0xe   : > { %p499_p9 = por %p77_p6, %p45_p1  ;;  %p272_p13 = scmp.lt.s32.totalorder %s434_s11, 2 }
   0xf   : > { %s504_s20 = scalar_select %p36_p7, %s422_s8, %s38_s15  }
  0x10   : > { %s625_s19 = scalar_select %p499_p9, 1, 0 }
  0x11   : > { %p506_p11 = por %p83_p10, %p51_p3  ;;  %s103_s22 = sand.u32 1, %s422_s8  }
  0x12   : > { %s251_s23 = sshll.u32 %s103_s22, 2  ;;  %s252_s24 = sshll.u32 %s430_s10, 6 }
  0x13   : > { %s626_s21 = scalar_select %p506_p11, 1, 0 }
  0x14   : > { %s517_s27 = scalar_lea.hbm %s620_s0, %s252_s24  ;;  %s107_s28 = scalar_lea.vmem [#allocation2], %s251_s23 }
  0x15   : > { %s115_s29 = sshll.u32 %s107_s28, 4  ;;  %p523_p0 = pnand %p272_p13, %p489_p4  ;;  %s519_s29 = int_to_ptr.vmem [resolvable:$true] %s115_s29 }
  0x16   : > { %s104_s2 = scalar_lea.sflag [#allocation3], %s103_s22  ;;  %s322_s3 = scalar_lea.hbm %s517_s27, 64 }
  0x17   : > { %p323_p3 = scmp.ne.s32.totalorder %s517_s27, %s322_s3  ;;  %p324_p5 = pneg %p523_p0 }
  0x18   : > { %s327_s12 = scalar_lea.hbm %s620_s0, 128  ;;  %p328_p4 = scmp.lt.u32.totalorder %s517_s27, %s620_s0 }
  0x19   : > { %p325_p6 = pnand %p324_p5, %p323_p3  ;;  %p329_p10 = scmp.lt.u32.totalorder %s327_s12, %s322_s3 }
  0x1a   : > { %p331_p12 = scmp.lt.u32.totalorder %s322_s3, %s517_s27 }
  0x1b   : > { %p326_p7 = pneg %p325_p6  ;;  %p330_p13 = por %p329_p10, %p328_p4 }
  0x1d   : > { %p332_p1 = por %p331_p12, %p330_p13 }
  0x1f   : > { %p333_p2 = pnand %p332_p1, %p326_p7 }
  0x21   : > { %336 = shalt.err (!%p333_p2)
}
  0x22   : > { %s337_s16 = scalar_lea.vmem %s519_s29, 64  ;;  %s436_s17 = smov [#allocation2]  }
  0x23   : > { %p338_p3 = scmp.ne.s32.totalorder %s519_s29, %s337_s16  ;;  %s342_s22 = sshll.u32 %s436_s17, 4  ;;  %s343_s22 = int_to_ptr.vmem [resolvable:$false] %s342_s22 }
  0x24   : > { %s344_s23 = scalar_lea.vmem %s343_s22, 128  ;;  %p345_p9 = scmp.lt.s32.totalorder %s519_s29, %s343_s22 }
  0x25   : > { %p340_p6 = pnand %p338_p3, %p324_p5  ;;  %p346_p4 = scmp.lt.s32.totalorder %s344_s23, %s337_s16 }
  0x27   : > { %p341_p11 = pneg %p340_p6  ;;  %p347_p10 = por %p346_p4, %p345_p9 }
  0x29   : > { %p348_p12 = pnand %p347_p10, %p341_p11 }
  0x2b   : > { %351 = shalt.err (!%p348_p12)
}
  0x2c   : > { %267 = dma.hbm_to_vmem [thread:$0]  (!%p523_p0), %s517_s27, 64, %s519_s29, %s104_s2  }
  0x2d   : > { %p628_p1 = scmp.lt.s32.totalorder %s434_s11, 3  ;;  %p629_p2 = scmp.ge.s32.totalorder %s434_s11, 1 }
  0x2f   : > { %p121_p5 = pnand %p629_p2, %p628_p1 }
  0x30   : > { %s559_s24 = sand.u32 (!%p121_p5), 1, %s418_s7  }
  0x31   : > { %124 = sbr.rel (%p121_p5) target bundleno = 83 (0x53), region = 24  ;;  %s254_s25 = sshll.u32 (!%p121_p5), %s559_s24, 2 }
  0x32   : > { %s127_s26 = scalar_lea.sflag (!%p121_p5), [#allocation3], %s559_s24  ;;  %s130_s28 = scalar_lea.vmem (!%p121_p5), [#allocation2], %s254_s25 }
  0x38   : > { %405 = dma.done.wait (%p495_p8), %s127_s26, 64  }
  0x39   : > { %407 = vsyncadd (%p495_p8), %s127_s26, 4294967232  ;;  %s148_s27 = scalar_lea.vmem [#allocation5], %s254_s25  ;;  %s257_s30 = sshll.u32 %s426_s9, 6  ;;  %vm150_vm0 = vcmask 101376   ;;  %v149_v0 = vld [vmem:[%s130_s28] sm:$0xf] }
  0x3a   : > { %s167_s29 = sshll.u32 %s148_s27, 4  ;;  %s573_s4 = scalar_lea.hbm %s621_s1, %s257_s30  ;;  %151 = vst.msk [vmem:[%s148_s27] sm:$0xf] %vm150_vm0, %v149_v0  ;;  %s568_s29 = int_to_ptr.vmem [resolvable:$true] %s167_s29 }
  0x3b   : > { %s153_s18 = scalar_lea.sflag [#allocation4], %s559_s24  ;;  %s352_s5 = scalar_lea.vmem %s568_s29, 64 }
  0x3c   : > { %p353_p8 = scmp.ne.s32.totalorder %s568_s29, %s352_s5  ;;  %p630_p9 = scmp.ne.s32.totalorder %s625_s19, 0 }
  0x3d   : > { %s437_s9 = smov [#allocation5]  }
  0x3e   : > { %p354_p11 = pnand %p353_p8, %p630_p9  ;;  %s356_s12 = sshll.u32 %s437_s9, 4  ;;  %s357_s12 = int_to_ptr.vmem [resolvable:$false] %s356_s12 }
  0x3f   : > { %s358_s13 = scalar_lea.vmem %s357_s12, 128  ;;  %p359_p7 = scmp.lt.s32.totalorder %s568_s29, %s357_s12 }
  0x40   : > { %p355_p0 = pneg %p354_p11  ;;  %p360_p13 = scmp.lt.s32.totalorder %s358_s13, %s352_s5 }
  0x42   : > { %p361_p3 = por %p360_p13, %p359_p7 }
  0x44   : > { %p362_p6 = pnand %p361_p3, %p355_p0 }
  0x46   : > { %365 = shalt.err (!%p362_p6)
}
  0x47   : > { %s366_s15 = scalar_lea.hbm %s573_s4, 64  ;;  %s370_s22 = scalar_lea.hbm %s621_s1, 128 }
  0x48   : > { %p367_p4 = scmp.ne.s32.totalorder %s573_s4, %s366_s15  ;;  %p371_p1 = scmp.lt.u32.totalorder %s573_s4, %s621_s1 }
  0x49   : > { %p372_p2 = scmp.lt.u32.totalorder %s370_s22, %s366_s15  ;;  %p374_p8 = scmp.lt.u32.totalorder %s366_s15, %s573_s4 }
  0x4a   : > { %p368_p10 = pnand %p367_p4, %p630_p9 }
  0x4b   : > { %p373_p5 = por %p372_p2, %p371_p1 }
  0x4c   : > { %p369_p12 = pneg %p368_p10 }
  0x4d   : > { %p375_p11 = por %p374_p8, %p373_p5 }
  0x4f   : > { %p376_p0 = pnand %p375_p11, %p369_p12 }
  0x51   : > { %379 = shalt.err (!%p376_p0)
}
  0x52   : > { %262 = dma.vmem_to_hbm [thread:$0]  (%p630_p9), %s568_s29, 64, %s573_s4, %s153_s18  }
  0x53 PF: > { %s179_s25 = sand.u32 1, %s414_s6   ;;  %p631_p7 = scmp.ne.s32.totalorder %s626_s21, 0 }
  0x54   : > { %p632_p13 = scmp.ge.s32.totalorder %s434_s11, 2  ;;  %s180_s26 = scalar_lea.sflag [#allocation4], %s179_s25 }
  0x56   : > { %p269_p3 = pnand %p632_p13, %p631_p7 }
  0x58   : > { %409 = dma.done.wait (!%p269_p3), %s180_s26, 64  }
  0x59   : > { %411 = vsyncadd (!%p269_p3), %s180_s26, 4294967232  ;;  %s17_s11 = sadd.s32 1, %s434_s11   ;;  %s633_s6 = smov %s418_s7 }
  0x5a   : > { %p14_p6 = scmp.ge.s32.totalorder %s17_s11, 4   ;;  %s634_s7 = smov %s422_s8 }
  0x5b   : > { %s635_s8 = smov %s504_s20  ;;  %s636_s9 = smov %s430_s10 }
  0x5c   : > { %s637_s10 = smov %s639_s14  ;;  %16 = sbr.rel (!%p14_p6) target bundleno = 6 (0x6), region = 69 }
  0x63   :  { %185 = vsyncpa [#allocation3], 1 }
  0x64   :  { %187 = vsyncpa [#allocation3 + $0x1], 1 }
  0x65   :  { %188 = vsyncpa [#allocation4], 1 }
  0x66   :  { %190 = vsyncpa [#allocation4 + $0x1], 1 }

</bundles_post_ra>
